<compile_context>
chip_gen: v7x
topology: tpu7x:2x2x1
jax: 0.10.0
libtpu: 0.0.40
codegen_flags: <defaults>
</compile_context>

<pallas_src>
import jax
import jax.numpy as jnp
from jax.experimental import pallas as pl
from jax.experimental.pallas import tpu as pltpu

_EPS = 1e-16


def _siou_loss_kernel(pred_ref, tgt_ref, mask_ref, xy_ref, out_ref,
                      sum_ref, cnt_ref):
    i = pl.program_id(0)

    @pl.when(i == 0)
    def _():
        sum_ref[...] = jnp.zeros_like(sum_ref)
        cnt_ref[...] = jnp.zeros_like(cnt_ref)

    m = mask_ref[...]                                  # (4, TN)
    p = pred_ref[...] * m                              # masked pred offsets
    t = tgt_ref[...] * m                               # masked target boxes
    xs0 = xy_ref[0:1, :]                               # (1, TN)
    ys0 = xy_ref[1:2, :]

    # amodal predicted boxes
    px1 = xs0 + p[0:1, :]
    py1 = ys0 + p[1:2, :]
    px2 = xs0 + p[2:3, :]
    py2 = ys0 + p[3:4, :]
    # target boxes
    tx1 = t[0:1, :]
    ty1 = t[1:2, :]
    tx2 = t[2:3, :]
    ty2 = t[3:4, :]

    # rows selected by `mask.sum(-1) > 0` in the torch code; padded lanes have
    # mask == 0 and therefore drop out of both the sum and the count.
    valid = jnp.sum(m, axis=0, keepdims=True) > 0.0    # (1, TN) bool

    # ---- SIoU.iou_ ----
    tlx = jnp.maximum(px1, tx1)
    tly = jnp.maximum(py1, ty1)
    brx = jnp.minimum(px2, tx2)
    bry = jnp.minimum(py2, ty2)
    pw = px2 - px1
    ph = py2 - py1
    tw = tx2 - tx1
    th = ty2 - ty1
    area_p = pw * ph
    area_g = tw * th
    en = ((tlx < brx) & (tly < bry)).astype(jnp.float32)
    area_i = (brx - tlx) * (bry - tly) * en
    iou = jnp.abs(area_i / (area_p + area_g - area_i + _EPS))

    # ---- SIoU.angle_loss ----
    pcx = (px1 + px2) * 0.5
    pcy = (py1 + py2) * 0.5
    tcx = (tx1 + tx2) * 0.5
    tcy = (ty1 + ty2) * 0.5
    dcx = tcx - pcx
    dcy = tcy - pcy
    cw_a = jnp.abs(dcx)
    ch_a = jnp.abs(dcy)
    inv_sigma = pl.reciprocal(jnp.sqrt(cw_a * cw_a + ch_a * ch_a) + _EPS,
                              approx=True)
    x1v = cw_a * inv_sigma
    x2v = ch_a * inv_sigma
    thr = 2.0 ** 0.5 / 2.0
    sin_a = jnp.where(x1v > thr, x2v, x1v)
    # cos(2*arcsin(x) - pi/2) == sin(2*arcsin(x)) == 2*x*sqrt(1-x^2), x in [0,1]
    L = 2.0 * sin_a * jnp.sqrt(jnp.maximum(1.0 - sin_a * sin_a, 0.0))

    # ---- SIoU.dist_loss ----
    cw = jnp.maximum(px2, tx2) - jnp.minimum(px1, tx1)
    ch = jnp.maximum(py2, ty2) - jnp.minimum(py1, ty1)
    rx = dcx * pl.reciprocal(cw + _EPS, approx=True)
    ry = dcy * pl.reciprocal(ch + _EPS, approx=True)
    Px = rx * rx
    Py = ry * ry
    gamma = 2.0 - L
    delta = (1.0 - jnp.exp(-gamma * Px)) + (1.0 - jnp.exp(-gamma * Py))

    # ---- SIoU.shape_loss ----
    ow = jnp.abs(pw - tw) / (jnp.maximum(pw, tw) + _EPS)
    oh = jnp.abs(ph - th) / (jnp.maximum(ph, th) + _EPS)
    ew = 1.0 - jnp.exp(-ow)
    eh = 1.0 - jnp.exp(-oh)
    ew2 = ew * ew
    eh2 = eh * eh
    omiga = ew2 * ew2 + eh2 * eh2

    # matches torch: 1 - iou + (dist*en + shape*en) / 2
    bbox_loss = 1.0 - iou + (delta * en + omiga * en) * 0.5      # (1, TN)

    masked_loss = jnp.where(valid, bbox_loss, 0.0)
    sum_ref[...] += jnp.sum(masked_loss, axis=1, keepdims=True)
    cnt_ref[...] += jnp.sum(valid.astype(jnp.float32), axis=1, keepdims=True)

    @pl.when(i == pl.num_programs(0) - 1)
    def _():
        out_ref[...] = sum_ref[...] / (cnt_ref[...] + 1e-8)


def iou_loss_pallas(output, mask, ind, target, hm, *, lane_tile=512):
    """IOUloss.forward with opt.use_siou=True.

    output: (b, 4, h, w) NCHW regression map
    mask:   (b, K, 4) float/bool object mask
    ind:    (b, K) int flattened spatial indices
    target: (b, K, 4) absolute [x1, y1, x2, y2] target boxes
    hm:     (b, *, h, w) heatmap, only its spatial shape is used
    """
    b, c, _, _ = output.shape
    assert c == 4
    K = ind.shape[1]
    h, w = hm.shape[2], hm.shape[3]
    HW = h * w
    N = b * K

    LANES = 128
    n_lanes = ((max(N, 1) + LANES - 1) // LANES) * LANES
    TN = min(lane_tile, n_lanes)
    Npad = ((n_lanes + TN - 1) // TN) * TN
    num_tiles = Npad // TN

    # ---- wrapper glue: gather + index arithmetic + lane-dense layout ----
    feat = jnp.transpose(output, (0, 2, 3, 1)).reshape(b * HW, 4)
    feat = feat.astype(jnp.float32)
    ind_flat = ind.reshape(N).astype(jnp.int32)
    batch_off = jnp.repeat(jnp.arange(b, dtype=jnp.int32), K) * HW
    pred = jnp.take(feat, batch_off + ind_flat, axis=0)          # (N, 4) gather

    ys0 = (ind_flat // w).astype(jnp.float32)
    xs0 = (ind_flat % w).astype(jnp.float32)

    def to_lane_dense(x_t):                                      # (R, N) -> (R, Npad)
        return jnp.pad(x_t.astype(jnp.float32), ((0, 0), (0, Npad - N)))

    pred_t = to_lane_dense(pred.T)
    tgt_t = to_lane_dense(target.reshape(N, 4).T)
    mask_t = to_lane_dense(mask.reshape(N, 4).T)
    xy_t = to_lane_dense(jnp.stack([xs0, ys0], axis=0))

    out = pl.pallas_call(
        _siou_loss_kernel,
        out_shape=jax.ShapeDtypeStruct((1, 1), jnp.float32),
        grid=(num_tiles,),
        in_specs=[
            pl.BlockSpec((4, TN), lambda i: (0, i)),   # pred (gathered, transposed)
            pl.BlockSpec((4, TN), lambda i: (0, i)),   # target
            pl.BlockSpec((4, TN), lambda i: (0, i)),   # mask
            pl.BlockSpec((2, TN), lambda i: (0, i)),   # [xs0; ys0]
        ],
        out_specs=pl.BlockSpec((1, 1), lambda i: (0, 0)),
        scratch_shapes=[
            pltpu.VMEM((1, 1), jnp.float32),           # loss-sum accumulator
            pltpu.VMEM((1, 1), jnp.float32),           # valid-count accumulator
        ],
        compiler_params=pltpu.CompilerParams(
            dimension_semantics=("arbitrary",)),
    )(pred_t, tgt_t, mask_t, xy_t)
    return out[0, 0]


if __name__ == "__main__":
    key = jax.random.PRNGKey(0)
    b, K, h, w = 2, 8, 16, 16
    k1, k2, k3, k4, k5 = jax.random.split(key, 5)

    # regression output NCHW, channels = (l, t, r, b) offsets from the indexed cell
    off = jax.random.uniform(k1, (b, 4, h, w), minval=0.5, maxval=3.0)
    sign = jnp.array([-1.0, -1.0, 1.0, 1.0], jnp.float32).reshape(1, 4, 1, 1)
    output = (off * sign).astype(jnp.float32)

    ind = jax.random.randint(k2, (b, K), 0, h * w).astype(jnp.int32)
    mask_obj = (jax.random.uniform(k3, (b, K)) < 0.75).astype(jnp.float32)
    mask = jnp.broadcast_to(mask_obj[..., None], (b, K, 4))

    # target: absolute [x1, y1, x2, y2] boxes around the indexed cell
    ys = (ind // w).astype(jnp.float32)
    xs = (ind % w).astype(jnp.float32)
    half_w = jax.random.uniform(k4, (b, K), minval=0.5, maxval=3.0)
    half_h = jax.random.uniform(k5, (b, K), minval=0.5, maxval=3.0)
    target = jnp.stack([xs - half_w, ys - half_h, xs + half_w, ys + half_h], axis=-1)

    hm = jnp.zeros((b, 1, h, w), jnp.float32)  # only spatial shape is used

    loss = iou_loss_pallas(output, mask, ind, target, hm)
    jax.block_until_ready(loss)
    print("KERNEL_OK")
</pallas_src>

<mosaic_0001>
module attributes {stable_mosaic.version = 11 : i64} {
  func.func @_siou_loss_kernel(%arg0: i32, %arg1: memref<4x128xf32, #tpu.memory_space<vmem>>, %arg2: memref<4x128xf32, #tpu.memory_space<vmem>>, %arg3: memref<4x128xf32, #tpu.memory_space<vmem>>, %arg4: memref<2x128xf32, #tpu.memory_space<vmem>>, %arg5: memref<1x1xf32, #tpu.memory_space<vmem>>, %arg6: memref<1x1xf32, #tpu.memory_space<vmem>>, %arg7: memref<1x1xf32, #tpu.memory_space<vmem>>) attributes {dimension_semantics = [#tpu.dimension_semantics<arbitrary>], iteration_bounds = array<i64: 1>, scalar_prefetch = 0 : i64, scratch_operands = 2 : i64, tpu.core_type = #tpu.core_type<tc>, window_params = [{transform_indices = @transform_0, window_bounds = array<i64: 4, 128>}, {transform_indices = @transform_1, window_bounds = array<i64: 4, 128>}, {transform_indices = @transform_2, window_bounds = array<i64: 4, 128>}, {transform_indices = @transform_3, window_bounds = array<i64: 2, 128>}, {pipeline_mode = #tpu.pipeline_mode<synchronous>, transform_indices = @transform_4, window_bounds = array<i64: 1, 1>}]} {
    %c0_i32 = arith.constant 0 : i32
    %0 = arith.cmpi eq, %arg0, %c0_i32 : i32
    %1 = arith.extui %0 : i1 to i32
    %c0_i32_0 = arith.constant 0 : i32
    %2 = arith.cmpi ne, %1, %c0_i32_0 : i32
    scf.if %2 {
      %cst_48 = arith.constant 0.000000e+00 : f32
      %171 = vector.broadcast %cst_48 : f32 to vector<1x1xf32>
      %c0_49 = arith.constant 0 : index
      %c0_50 = arith.constant 0 : index
      %172 = vector.load %arg6[%c0_49, %c0_50] : memref<1x1xf32, #tpu.memory_space<vmem>>, vector<1x1xf32>
      tpu.vector_store %arg6[%c0_49, %c0_50], %171 {strides = array<i32>} : memref<1x1xf32, #tpu.memory_space<vmem>>, vector<1x1xf32>,
      %cst_51 = arith.constant 0.000000e+00 : f32
      %173 = vector.broadcast %cst_51 : f32 to vector<1x1xf32>
      %c0_52 = arith.constant 0 : index
      %c0_53 = arith.constant 0 : index
      %174 = vector.load %arg7[%c0_52, %c0_53] : memref<1x1xf32, #tpu.memory_space<vmem>>, vector<1x1xf32>
      tpu.vector_store %arg7[%c0_52, %c0_53], %173 {strides = array<i32>} : memref<1x1xf32, #tpu.memory_space<vmem>>, vector<1x1xf32>,
    } else {
    }
    %c0 = arith.constant 0 : index
    %c0_1 = arith.constant 0 : index
    %3 = vector.load %arg3[%c0, %c0_1] : memref<4x128xf32, #tpu.memory_space<vmem>>, vector<4x128xf32>
    %c0_2 = arith.constant 0 : index
    %c0_3 = arith.constant 0 : index
    %4 = vector.load %arg1[%c0_2, %c0_3] : memref<4x128xf32, #tpu.memory_space<vmem>>, vector<4x128xf32>
    %5 = arith.mulf %4, %3 : vector<4x128xf32>
    %c0_4 = arith.constant 0 : index
    %c0_5 = arith.constant 0 : index
    %6 = vector.load %arg2[%c0_4, %c0_5] : memref<4x128xf32, #tpu.memory_space<vmem>>, vector<4x128xf32>
    %7 = arith.mulf %6, %3 : vector<4x128xf32>
    %c0_6 = arith.constant 0 : index
    %c0_7 = arith.constant 0 : index
    %8 = vector.load %arg4[%c0_6, %c0_7] : memref<2x128xf32, #tpu.memory_space<vmem>>, vector<1x128xf32>
    %c1 = arith.constant 1 : index
    %c0_8 = arith.constant 0 : index
    %9 = vector.load %arg4[%c1, %c0_8] : memref<2x128xf32, #tpu.memory_space<vmem>>, vector<1x128xf32>
    %10 = vector.extract_strided_slice %5 {offsets = [0, 0], sizes = [1, 128], strides = [1, 1]} : vector<4x128xf32> to vector<1x128xf32>
    %11 = arith.addf %8, %10 : vector<1x128xf32>
    %12 = vector.extract_strided_slice %5 {offsets = [1, 0], sizes = [1, 128], strides = [1, 1]} : vector<4x128xf32> to vector<1x128xf32>
    %13 = arith.addf %9, %12 : vector<1x128xf32>
    %14 = vector.extract_strided_slice %5 {offsets = [2, 0], sizes = [1, 128], strides = [1, 1]} : vector<4x128xf32> to vector<1x128xf32>
    %15 = arith.addf %8, %14 : vector<1x128xf32>
    %16 = vector.extract_strided_slice %5 {offsets = [3, 0], sizes = [1, 128], strides = [1, 1]} : vector<4x128xf32> to vector<1x128xf32>
    %17 = arith.addf %9, %16 : vector<1x128xf32>
    %18 = vector.extract_strided_slice %7 {offsets = [0, 0], sizes = [1, 128], strides = [1, 1]} : vector<4x128xf32> to vector<1x128xf32>
    %19 = vector.extract_strided_slice %7 {offsets = [1, 0], sizes = [1, 128], strides = [1, 1]} : vector<4x128xf32> to vector<1x128xf32>
    %20 = vector.extract_strided_slice %7 {offsets = [2, 0], sizes = [1, 128], strides = [1, 1]} : vector<4x128xf32> to vector<1x128xf32>
    %21 = vector.extract_strided_slice %7 {offsets = [3, 0], sizes = [1, 128], strides = [1, 1]} : vector<4x128xf32> to vector<1x128xf32>
    %cst = arith.constant dense<0.000000e+00> : vector<128xf32>
    %22 = vector.multi_reduction <add>, %3, %cst [0] : vector<4x128xf32> to vector<128xf32>
    %23 = vector.shape_cast %22 : vector<128xf32> to vector<1x128xf32>
    %cst_9 = arith.constant 0.000000e+00 : f32
    %24 = vector.broadcast %cst_9 : f32 to vector<1x128xf32>
    %25 = arith.cmpf ogt, %23, %24 : vector<1x128xf32>
    %26 = arith.maximumf %11, %18 : vector<1x128xf32>
    %27 = arith.maximumf %13, %19 : vector<1x128xf32>
    %28 = arith.minimumf %15, %20 : vector<1x128xf32>
    %29 = arith.minimumf %17, %21 : vector<1x128xf32>
    %30 = arith.subf %15, %11 : vector<1x128xf32>
    %31 = arith.subf %17, %13 : vector<1x128xf32>
    %32 = arith.subf %20, %18 : vector<1x128xf32>
    %33 = arith.subf %21, %19 : vector<1x128xf32>
    %34 = arith.mulf %30, %31 : vector<1x128xf32>
    %35 = arith.mulf %32, %33 : vector<1x128xf32>
    %36 = arith.cmpf olt, %26, %28 : vector<1x128xf32>
    %37 = arith.cmpf olt, %27, %29 : vector<1x128xf32>
    %38 = arith.andi %36, %37 : vector<1x128xi1>
    %39 = arith.extui %38 : vector<1x128xi1> to vector<1x128xi32>
    %40 = arith.sitofp %39 : vector<1x128xi32> to vector<1x128xf32>
    %41 = arith.subf %28, %26 : vector<1x128xf32>
    %42 = arith.subf %29, %27 : vector<1x128xf32>
    %43 = arith.mulf %41, %42 : vector<1x128xf32>
    %44 = arith.mulf %43, %40 : vector<1x128xf32>
    %45 = arith.addf %34, %35 : vector<1x128xf32>
    %46 = arith.subf %45, %44 : vector<1x128xf32>
    %cst_10 = arith.constant 1.000000e-16 : f32
    %47 = vector.broadcast %cst_10 : f32 to vector<1x128xf32>
    %48 = arith.addf %46, %47 : vector<1x128xf32>
    %49 = arith.divf %44, %48 : vector<1x128xf32>
    %50 = math.absf %49 : vector<1x128xf32>
    %51 = arith.addf %11, %15 : vector<1x128xf32>
    %cst_11 = arith.constant 5.000000e-01 : f32
    %52 = vector.broadcast %cst_11 : f32 to vector<1x128xf32>
    %53 = arith.mulf %51, %52 : vector<1x128xf32>
    %54 = arith.addf %13, %17 : vector<1x128xf32>
    %cst_12 = arith.constant 5.000000e-01 : f32
    %55 = vector.broadcast %cst_12 : f32 to vector<1x128xf32>
    %56 = arith.mulf %54, %55 : vector<1x128xf32>
    %57 = arith.addf %18, %20 : vector<1x128xf32>
    %cst_13 = arith.constant 5.000000e-01 : f32
    %58 = vector.broadcast %cst_13 : f32 to vector<1x128xf32>
    %59 = arith.mulf %57, %58 : vector<1x128xf32>
    %60 = arith.addf %19, %21 : vector<1x128xf32>
    %cst_14 = arith.constant 5.000000e-01 : f32
    %61 = vector.broadcast %cst_14 : f32 to vector<1x128xf32>
    %62 = arith.mulf %60, %61 : vector<1x128xf32>
    %63 = arith.subf %59, %53 : vector<1x128xf32>
    %64 = arith.subf %62, %56 : vector<1x128xf32>
    %65 = math.absf %63 : vector<1x128xf32>
    %66 = math.absf %64 : vector<1x128xf32>
    %67 = arith.mulf %65, %65 : vector<1x128xf32>
    %68 = arith.mulf %66, %66 : vector<1x128xf32>
    %69 = arith.addf %67, %68 : vector<1x128xf32>
    %70 = math.sqrt %69 : vector<1x128xf32>
    %cst_15 = arith.constant 1.000000e-16 : f32
    %71 = vector.broadcast %cst_15 : f32 to vector<1x128xf32>
    %72 = arith.addf %70, %71 : vector<1x128xf32>
    %73 = tpu.reciprocal %72 {approx = true} : vector<1x128xf32> -> vector<1x128xf32>
    %74 = arith.mulf %65, %73 : vector<1x128xf32>
    %75 = arith.mulf %66, %73 : vector<1x128xf32>
    %cst_16 = arith.constant 0.707106769 : f32
    %76 = vector.broadcast %cst_16 : f32 to vector<1x128xf32>
    %77 = arith.cmpf ogt, %74, %76 : vector<1x128xf32>
    %78 = arith.select %77, %75, %74 : vector<1x128xi1>, vector<1x128xf32>
    %cst_17 = arith.constant 2.000000e+00 : f32
    %79 = vector.broadcast %cst_17 : f32 to vector<1x128xf32>
    %80 = arith.mulf %79, %78 : vector<1x128xf32>
    %81 = arith.mulf %78, %78 : vector<1x128xf32>
    %cst_18 = arith.constant 1.000000e+00 : f32
    %82 = vector.broadcast %cst_18 : f32 to vector<1x128xf32>
    %83 = arith.subf %82, %81 : vector<1x128xf32>
    %cst_19 = arith.constant 0.000000e+00 : f32
    %84 = vector.broadcast %cst_19 : f32 to vector<1x128xf32>
    %85 = arith.maximumf %83, %84 : vector<1x128xf32>
    %86 = math.sqrt %85 : vector<1x128xf32>
    %87 = arith.mulf %80, %86 : vector<1x128xf32>
    %88 = arith.maximumf %15, %20 : vector<1x128xf32>
    %89 = arith.minimumf %11, %18 : vector<1x128xf32>
    %90 = arith.subf %88, %89 : vector<1x128xf32>
    %91 = arith.maximumf %17, %21 : vector<1x128xf32>
    %92 = arith.minimumf %13, %19 : vector<1x128xf32>
    %93 = arith.subf %91, %92 : vector<1x128xf32>
    %cst_20 = arith.constant 1.000000e-16 : f32
    %94 = vector.broadcast %cst_20 : f32 to vector<1x128xf32>
    %95 = arith.addf %90, %94 : vector<1x128xf32>
    %96 = tpu.reciprocal %95 {approx = true} : vector<1x128xf32> -> vector<1x128xf32>
    %97 = arith.mulf %63, %96 : vector<1x128xf32>
    %cst_21 = arith.constant 1.000000e-16 : f32
    %98 = vector.broadcast %cst_21 : f32 to vector<1x128xf32>
    %99 = arith.addf %93, %98 : vector<1x128xf32>
    %100 = tpu.reciprocal %99 {approx = true} : vector<1x128xf32> -> vector<1x128xf32>
    %101 = arith.mulf %64, %100 : vector<1x128xf32>
    %102 = arith.mulf %97, %97 : vector<1x128xf32>
    %103 = arith.mulf %101, %101 : vector<1x128xf32>
    %cst_22 = arith.constant 2.000000e+00 : f32
    %104 = vector.broadcast %cst_22 : f32 to vector<1x128xf32>
    %105 = arith.subf %104, %87 : vector<1x128xf32>
    %cst_23 = arith.constant 0.000000e+00 : f32
    %106 = vector.broadcast %cst_23 : f32 to vector<1x128xf32>
    %107 = arith.subf %106, %105 : vector<1x128xf32>
    %108 = arith.mulf %107, %102 : vector<1x128xf32>
    %109 = math.exp %108 : vector<1x128xf32>
    %cst_24 = arith.constant 1.000000e+00 : f32
    %110 = vector.broadcast %cst_24 : f32 to vector<1x128xf32>
    %111 = arith.subf %110, %109 : vector<1x128xf32>
    %cst_25 = arith.constant 0.000000e+00 : f32
    %112 = vector.broadcast %cst_25 : f32 to vector<1x128xf32>
    %113 = arith.subf %112, %105 : vector<1x128xf32>
    %114 = arith.mulf %113, %103 : vector<1x128xf32>
    %115 = math.exp %114 : vector<1x128xf32>
    %cst_26 = arith.constant 1.000000e+00 : f32
    %116 = vector.broadcast %cst_26 : f32 to vector<1x128xf32>
    %117 = arith.subf %116, %115 : vector<1x128xf32>
    %118 = arith.addf %111, %117 : vector<1x128xf32>
    %119 = arith.subf %30, %32 : vector<1x128xf32>
    %120 = math.absf %119 : vector<1x128xf32>
    %121 = arith.maximumf %30, %32 : vector<1x128xf32>
    %cst_27 = arith.constant 1.000000e-16 : f32
    %122 = vector.broadcast %cst_27 : f32 to vector<1x128xf32>
    %123 = arith.addf %121, %122 : vector<1x128xf32>
    %124 = arith.divf %120, %123 : vector<1x128xf32>
    %125 = arith.subf %31, %33 : vector<1x128xf32>
    %126 = math.absf %125 : vector<1x128xf32>
    %127 = arith.maximumf %31, %33 : vector<1x128xf32>
    %cst_28 = arith.constant 1.000000e-16 : f32
    %128 = vector.broadcast %cst_28 : f32 to vector<1x128xf32>
    %129 = arith.addf %127, %128 : vector<1x128xf32>
    %130 = arith.divf %126, %129 : vector<1x128xf32>
    %cst_29 = arith.constant 0.000000e+00 : f32
    %131 = vector.broadcast %cst_29 : f32 to vector<1x128xf32>
    %132 = arith.subf %131, %124 : vector<1x128xf32>
    %133 = math.exp %132 : vector<1x128xf32>
    %cst_30 = arith.constant 1.000000e+00 : f32
    %134 = vector.broadcast %cst_30 : f32 to vector<1x128xf32>
    %135 = arith.subf %134, %133 : vector<1x128xf32>
    %cst_31 = arith.constant 0.000000e+00 : f32
    %136 = vector.broadcast %cst_31 : f32 to vector<1x128xf32>
    %137 = arith.subf %136, %130 : vector<1x128xf32>
    %138 = math.exp %137 : vector<1x128xf32>
    %cst_32 = arith.constant 1.000000e+00 : f32
    %139 = vector.broadcast %cst_32 : f32 to vector<1x128xf32>
    %140 = arith.subf %139, %138 : vector<1x128xf32>
    %141 = arith.mulf %135, %135 : vector<1x128xf32>
    %142 = arith.mulf %140, %140 : vector<1x128xf32>
    %143 = arith.mulf %141, %141 : vector<1x128xf32>
    %144 = arith.mulf %142, %142 : vector<1x128xf32>
    %145 = arith.addf %143, %144 : vector<1x128xf32>
    %cst_33 = arith.constant 1.000000e+00 : f32
    %146 = vector.broadcast %cst_33 : f32 to vector<1x128xf32>
    %147 = arith.subf %146, %50 : vector<1x128xf32>
    %148 = arith.mulf %118, %40 : vector<1x128xf32>
    %149 = arith.mulf %145, %40 : vector<1x128xf32>
    %150 = arith.addf %148, %149 : vector<1x128xf32>
    %cst_34 = arith.constant 5.000000e-01 : f32
    %151 = vector.broadcast %cst_34 : f32 to vector<1x128xf32>
    %152 = arith.mulf %150, %151 : vector<1x128xf32>
    %153 = arith.addf %147, %152 : vector<1x128xf32>
    %cst_35 = arith.constant 0.000000e+00 : f32
    %154 = vector.broadcast %cst_35 : f32 to vector<1x128xf32>
    %155 = arith.select %25, %153, %154 : vector<1x128xi1>, vector<1x128xf32>
    %c0_36 = arith.constant 0 : index
    %c0_37 = arith.constant 0 : index
    %156 = vector.load %arg6[%c0_36, %c0_37] : memref<1x1xf32, #tpu.memory_space<vmem>>, vector<1x1xf32>
    %cst_38 = arith.constant dense<0.000000e+00> : vector<1xf32>
    %157 = vector.multi_reduction <add>, %155, %cst_38 [1] : vector<1x128xf32> to vector<1xf32>
    %158 = vector.shape_cast %157 : vector<1xf32> to vector<1x1xf32>
    %159 = arith.addf %156, %158 : vector<1x1xf32>
    %c0_39 = arith.constant 0 : index
    %c0_40 = arith.constant 0 : index
    %160 = vector.load %arg6[%c0_39, %c0_40] : memref<1x1xf32, #tpu.memory_space<vmem>>, vector<1x1xf32>
    tpu.vector_store %arg6[%c0_39, %c0_40], %159 {strides = array<i32>} : memref<1x1xf32, #tpu.memory_space<vmem>>, vector<1x1xf32>,
    %c0_41 = arith.constant 0 : index
    %c0_42 = arith.constant 0 : index
    %161 = vector.load %arg7[%c0_41, %c0_42] : memref<1x1xf32, #tpu.memory_space<vmem>>, vector<1x1xf32>
    %162 = arith.extui %25 : vector<1x128xi1> to vector<1x128xi32>
    %163 = arith.sitofp %162 : vector<1x128xi32> to vector<1x128xf32>
    %cst_43 = arith.constant dense<0.000000e+00> : vector<1xf32>
    %164 = vector.multi_reduction <add>, %163, %cst_43 [1] : vector<1x128xf32> to vector<1xf32>
    %165 = vector.shape_cast %164 : vector<1xf32> to vector<1x1xf32>
    %166 = arith.addf %161, %165 : vector<1x1xf32>
    %c0_44 = arith.constant 0 : index
    %c0_45 = arith.constant 0 : index
    %167 = vector.load %arg7[%c0_44, %c0_45] : memref<1x1xf32, #tpu.memory_space<vmem>>, vector<1x1xf32>
    tpu.vector_store %arg7[%c0_44, %c0_45], %166 {strides = array<i32>} : memref<1x1xf32, #tpu.memory_space<vmem>>, vector<1x1xf32>,
    %c0_i32_46 = arith.constant 0 : i32
    %168 = arith.cmpi eq, %arg0, %c0_i32_46 : i32
    %169 = arith.extui %168 : i1 to i32
    %c0_i32_47 = arith.constant 0 : i32
    %170 = arith.cmpi ne, %169, %c0_i32_47 : i32
    scf.if %170 {
      %c0_48 = arith.constant 0 : index
      %c0_49 = arith.constant 0 : index
      %171 = vector.load %arg6[%c0_48, %c0_49] : memref<1x1xf32, #tpu.memory_space<vmem>>, vector<1x1xf32>
      %c0_50 = arith.constant 0 : index
      %c0_51 = arith.constant 0 : index
      %172 = vector.load %arg7[%c0_50, %c0_51] : memref<1x1xf32, #tpu.memory_space<vmem>>, vector<1x1xf32>
      %cst_52 = arith.constant 9.99999993E-9 : f32
      %173 = vector.broadcast %cst_52 : f32 to vector<1x1xf32>
      %174 = arith.addf %172, %173 : vector<1x1xf32>
      %175 = arith.divf %171, %174 : vector<1x1xf32>
      %c0_53 = arith.constant 0 : index
      %c0_54 = arith.constant 0 : index
      %176 = vector.load %arg5[%c0_53, %c0_54] : memref<1x1xf32, #tpu.memory_space<vmem>>, vector<1x1xf32>
      tpu.vector_store %arg5[%c0_53, %c0_54], %175 {strides = array<i32>} : memref<1x1xf32, #tpu.memory_space<vmem>>, vector<1x1xf32>,
    } else {
    }
    return
  }
  func.func @transform_0(%arg0: i32) -> (i32, i32) {
    %c0_i32 = arith.constant 0 : i32
    %c0_i32_0 = arith.constant 0 : i32
    return %c0_i32, %arg0 : i32, i32
  }
  func.func @transform_1(%arg0: i32) -> (i32, i32) {
    %c0_i32 = arith.constant 0 : i32
    %c0_i32_0 = arith.constant 0 : i32
    return %c0_i32, %arg0 : i32, i32
  }
  func.func @transform_2(%arg0: i32) -> (i32, i32) {
    %c0_i32 = arith.constant 0 : i32
    %c0_i32_0 = arith.constant 0 : i32
    return %c0_i32, %arg0 : i32, i32
  }
  func.func @transform_3(%arg0: i32) -> (i32, i32) {
    %c0_i32 = arith.constant 0 : i32
    %c0_i32_0 = arith.constant 0 : i32
    return %c0_i32, %arg0 : i32, i32
  }
  func.func @transform_4(%arg0: i32) -> (i32, i32) {
    %c0_i32 = arith.constant 0 : i32
    %c0_i32_0 = arith.constant 0 : i32
    %c0_i32_1 = arith.constant 0 : i32
    return %c0_i32, %c0_i32_0 : i32, i32
  }
}

</mosaic_0001>

<bundles_post_ra>
// kernel: tpu_custom_call.1
= control target key start
LH: loop header
LB: loop body
LE: loop exit
PB: predicated region body
PF: predicated region fallthrough
CT: control target
= control target key end

     0   :  { %9 = vsyncpa [#allocation5], 0  ;;  %s506_s0 = inlined_call_operand.hbm [shape: f32[4,128], index: 0, kind: input, shape index: {}]   ;;  %s507_s1 = inlined_call_operand.hbm [shape: f32[4,128], index: 1, kind: input, shape index: {}]   ;;  %s508_s2 = inlined_call_operand.vmem [shape: f32[4,128], index: 2, kind: input, shape index: {}]   ;;  %s509_s3 = inlined_call_operand.vmem [shape: f32[2,128], index: 3, kind: input, shape index: {}]   ;;  %s510_s4 = inlined_call_operand.hbm [shape: f32[1,1], index: 4, kind: output, shape index: {}]  }
   0x1   :  { %10 = vsyncpa [#allocation8], 0 }
   0x2   :  { %11 = vsyncpa [#allocation6], 0  ;;  %s376_s15 = smov [#allocation4]   ;;  %s377_s17 = smov [#allocation7]  }
   0x3   :  { %s18_s16 = sshll.u32 %s376_s15, 4  ;;  %s28_s18 = sshll.u32 %s377_s17, 4  ;;  %s19_s16 = int_to_ptr.vmem [resolvable:$true] %s18_s16  ;;  %s29_s18 = int_to_ptr.vmem [resolvable:$true] %s28_s18 }
   0x4   :  { %s304_s21 = scalar_lea.hbm %s506_s0, 64 }
   0x5   :  { %p305_p0 = scmp.ne.s32.totalorder %s506_s0, %s304_s21  ;;  %p308_p1 = scmp.lt.u32.totalorder %s304_s21, %s506_s0 }
   0x7   :  { %p310_p2 = pnand %p308_p1, %p305_p0 }
   0x9   :  { %313 = shalt.err (!%p310_p2)
}
   0xa   :  { %s314_s26 = scalar_lea.vmem %s19_s16, 64  ;;  %p319_p4 = scmp.lt.s32.totalorder %s19_s16, %s19_s16 }
   0xb   :  { %p315_p3 = scmp.ne.s32.totalorder %s19_s16, %s314_s26  ;;  %p320_p5 = scmp.lt.s32.totalorder %s314_s26, %s314_s26 }
   0xd   :  { %p321_p6 = por %p320_p5, %p319_p4 }
   0xf   :  { %p322_p7 = pnand %p321_p6, %p315_p3 }
  0x11   :  { %325 = shalt.err (!%p322_p7)
}
  0x12   :  { %21 = dma.hbm_to_vmem [thread:$0]  %s506_s0, 64, %s19_s16, [#allocation5]  }
  0x13   :  { %s326_s5 = scalar_lea.hbm %s507_s1, 64 }
  0x14   :  { %p327_p8 = scmp.ne.s32.totalorder %s507_s1, %s326_s5  ;;  %p330_p9 = scmp.lt.u32.totalorder %s326_s5, %s507_s1 }
  0x16   :  { %p332_p10 = pnand %p330_p9, %p327_p8 }
  0x18   :  { %335 = shalt.err (!%p332_p10)
}
  0x19   :  { %s336_s10 = scalar_lea.vmem %s29_s18, 64  ;;  %p341_p12 = scmp.lt.s32.totalorder %s29_s18, %s29_s18 }
  0x1a   :  { %p337_p11 = scmp.ne.s32.totalorder %s29_s18, %s336_s10  ;;  %p342_p13 = scmp.lt.s32.totalorder %s336_s10, %s336_s10 }
  0x1c   :  { %p343_p0 = por %p342_p13, %p341_p12 }
  0x1e   :  { %p344_p1 = pnand %p343_p0, %p337_p11 }
  0x20   :  { %347 = shalt.err (!%p344_p1)
}
  0x21   :  { %31 = dma.hbm_to_vmem [thread:$0]  %s507_s1, 64, %s29_s18, [#allocation8]  }
  0x22   :  { %370 = dma.done.wait [#allocation5], 64  }
  0x23   :  { %371 = vsyncadd [#allocation5], 4294967232 }
  0x24   :  { %372 = dma.done.wait [#allocation8], 64  }
  0x25   :  { %373 = vsyncadd [#allocation8], 4294967232  ;;  %vm46_vm0 = vcmask 0   ;;  %v378_v0 = vmov 0.0   ;;  %vm67_vm1 = vcmask 1043456   ;;  %vm233_vm11 = vcmask 1040384  }
  0x26   :  { %47 = vst.msk [vmem:[#allocation2] sm:$0x1] %vm46_vm0, %v378_v0  ;;  %48 = vst.msk [vmem:[#allocation3] sm:$0x1] %vm46_vm0, %v378_v0  ;;  %v49_v1 = vld [vmem:[%s508_s2] sm:$0xf] }
  0x27   :  { %v50_v2 = vld [vmem:[#allocation4] sm:$0xf]  ;;  %v52_v3 = vld [vmem:[#allocation7] sm:$0xf]  ;;  %v54_v4 = vld [vmem:[%s509_s3] sm:$0x1] }
  0x28   :  { %v68_v5 = vsel %vm67_vm1, %v49_v1, 0.0  ;;  %v51_v6 = vmul.f32 %v50_v2, %v49_v1  ;;  %v437_v7 = vmul.f32 %v52_v3, %v49_v1  ;;  %v55_v8 = vld [vmem:[%s509_s3 + $0x1] sm:$0x1]  ;;  %s379_s2 = smov [#allocation9]  }
  0x29   :  { %v69_v9 = vrot.slane %v68_v5, 4  ;;  %s262_s3 = sshll.u32 %s379_s2, 4  ;;  %s263_s3 = int_to_ptr.vmem [resolvable:$true] %s262_s3 }
  0x2a   :  { %v442_v10 = vadd.f32 %v54_v4, %v51_v6  ;;  %v58_v11 = vrot.slane %v51_v6, 1  ;;  %v61_v12 = vrot.slane %v51_v6, 2  ;;  %v64_v13 = vrot.slane %v51_v6, 3  ;;  %s348_s17 = scalar_lea.vmem %s263_s3, 16  ;;  %s352_s18 = scalar_lea.vmem %s263_s3, 32 }
  0x2b   :  { %v70_v14 = vadd.f32 %v69_v9, %v68_v5  ;;  %v78_v15 = vrot.slane %v437_v7, 1  ;;  %v446_v16 = vrot.slane %v437_v7, 2  ;;  %v84_v17 = vrot.slane %v437_v7, 3  ;;  %p349_p2 = scmp.ne.s32.totalorder %s263_s3, %s348_s17  ;;  %p353_p3 = scmp.lt.s32.totalorder %s263_s3, %s263_s3 }
  0x2c   :  { %v60_v18 = vadd.f32 %v58_v11, %v55_v8  ;;  %v449_v19 = vadd.f32 %v61_v12, %v54_v4  ;;  %v66_v20 = vadd.f32 %v64_v13, %v55_v8  ;;  %v76_v21 = vmax.f32 %v442_v10, %v437_v7  ;;  %p354_p4 = scmp.lt.s32.totalorder %s352_s18, %s348_s17 }
  0x2d   :  { %v71_v22 = vrot.slane %v70_v14, 2  ;;  %v119_v28 = vadd.f32 %v446_v16, %v437_v7  ;;  %v89_v50 = vrot.slane %v437_v7, 6  ;;  %v166_v8 = vmin.f32 %v442_v10, %v437_v7 }
  0x2e   :  { %v80_v23 = vmax.f32 %v60_v18, %v78_v15  ;;  %v83_v24 = vmin.f32 %v449_v19, %v446_v16  ;;  %v86_v25 = vmin.f32 %v66_v20, %v84_v17  ;;  %v115_v34 = vadd.f32 %v449_v19, %v442_v10  ;;  %p355_p5 = por %p354_p4, %p353_p3 }
  0x2f   :  { %v72_v26 = vadd.f32 %v71_v22, %v70_v14  ;;  %v117_v35 = vadd.f32 %v66_v20, %v60_v18  ;;  %v120_v36 = vmul.f32 0.5, %v119_v28  ;;  %v91_v51 = vsub.f32 %v437_v7, %v89_v50 }
  0x30   :  { %vm97_vm2 = vcmp.lt.f32.partialorder %v76_v21, %v83_v24  ;;  %vm98_vm3 = vcmp.lt.f32.partialorder %v80_v23, %v86_v25  ;;  %v102_v30 = vsub.f32 %v83_v24, %v76_v21  ;;  %v103_v31 = vsub.f32 %v86_v25, %v80_v23  ;;  %p356_p6 = pnand %p355_p5, %p349_p2 }
  0x31   :  { %v73_v27 = vrot.slane %v72_v26, 1  ;;  %vm99_vm4 = vmand %vm97_vm2, %vm98_vm3  ;;  %v116_v39 = vmul.f32 0.5, %v115_v34  ;;  %v118_v40 = vmul.f32 0.5, %v117_v35  ;;  %v87_v55 = vsub.f32 %v449_v19, %v442_v10 }
  0x32   :  { %v457_v29 = vsel %vm99_vm4, 1.0, %v378_v0  ;;  %v104_v33 = vmul.f32 %v103_v31, %v102_v30  ;;  %v196_v57 = vrot.slane %v91_v51, 2  ;;  %v88_v58 = vsub.f32 %v66_v20, %v60_v18 }
  0x33   :  { %v459_v32 = vadd.f32 %v73_v27, %v72_v26  ;;  %v469_v41 = vsub.f32 %v120_v36, %v116_v39  ;;  %v123_v42 = vrot.slane %v118_v40, 7  ;;  %v204_v60 = vrot.slane %v91_v51, 3 }
  0x34   :  { %v467_v38 = vmul.f32 %v457_v29, %v104_v33  ;;  %v200_v62 = vmax.f32 %v87_v55, %v196_v57  ;;  %v169_v1 = vmin.f32 %v60_v18, %v78_v15  ;;  %v165_v6 = vmax.f32 %v449_v19, %v446_v16 }
  0x35   :  { %vm75_vm5 = vcmp.gt.f32.partialorder %v459_v32, 0.0  ;;  %v471_v43 = vsub.f32 %v120_v36, %v123_v42  ;;  %v126_v44 = vand.u32 2147483647, %v469_v41  ;;  %v208_v63 = vmax.f32 %v88_v58, %v204_v60 }
  0x36   :  { %v273_v37 = vsel %vm75_vm5, 1.0, %v378_v0  ;;  %v168_v0 = vmax.f32 %v66_v20, %v84_v17  ;;  %v201_v2 = vadd.f32 1e-16, %v200_v62  ;;  %v198_v14 = vsub.f32 %v87_v55, %v196_v57 }
  0x37   :  { %243 = vadd.xlane.f32.xlu0 %v273_v37  ;;  %v127_v45 = vand.u32 2147483647, %v471_v43  ;;  %v128_v46 = vmul.f32 %v126_v44, %v126_v44  ;;  %v209_v3 = vadd.f32 1e-16, %v208_v63  ;;  %v206_v17 = vsub.f32 %v88_v58, %v204_v60 }
  0x38   :  { %v170_v4 = vsub.f32 %v168_v0, %v169_v1  ;;  %v167_v15 = vsub.f32 %v165_v6, %v166_v8  ;;  %v199_v21 = vand.u32 2147483647, %v198_v14  ;;  %v94_v7 = vrot.slane %v91_v51, 1 }
  0x39   :  { %v129_v47 = vmul.f32 %v127_v45, %v127_v45  ;;  %v207_v24 = vand.u32 2147483647, %v206_v17  ;;  %v92_v36 = vmul.f32 %v88_v58, %v87_v55 }
  0x3a   :  { %v174_v12 = vadd.f32 1e-16, %v170_v4  ;;  %v171_v16 = vadd.f32 1e-16, %v167_v15  ;;  %v96_v31 = vmul.f32 %v94_v7, %v91_v51 }
  0x3b   :  { %v131_v48 = vrot.slane %v129_v47, 1 }
  0x3c   :  { %v107_v37 = vrot.slane %v96_v31, 2 }
  0x3d   :  { %v133_v49 = vadd.f32 %v131_v48, %v128_v46 }
  0x3f   :  { %278 = vrsqrt.f32 %v133_v49  ;;  %vm136_vm6 = vcmp.eq.f32.partialorder %v133_v49, inf  ;;  %v139_v53 = vand.u32 2147483648, %v133_v49  ;;  %vm138_vm7 = vcmp.eq.f32.partialorder %v133_v49, 0.0 }
  0x49   :  { %v279_v52 = vpop.eup %278 }
  0x4a   :  { %v135_v54 = vmul.f32 %v279_v52, %v133_v49 }
  0x4c   :  { %v137_v56 = vsel %vm136_vm6, %v133_v49, %v135_v54 }
  0x4d   :  { %v140_v59 = vsel %vm138_vm7, %v139_v53, %v137_v56 }
  0x4e   :  { %v141_v61 = vadd.f32 1e-16, %v140_v59 }
  0x50   :  { %280 = vrcp.f32 %v141_v61 }
  0x51   :  { %282 = vrcp.f32 %v201_v2 }
  0x52   :  { %284 = vrcp.f32 %v209_v3 }
  0x53   :  { %286 = vrcp.f32 %v174_v12 }
  0x54   :  { %288 = vrcp.f32 %v171_v16 }
  0x5a   :  { %v281_v5 = vpop.eup %280 }
  0x5b   :  { %v143_v9 = vmul.f32 %v281_v5, %v126_v44  ;;  %v145_v11 = vrot.slane %v281_v5, 7  ;;  %v283_v22 = vpop.eup %282 }
  0x5c   :  { %v285_v25 = vpop.eup %284  ;;  %v203_v26 = vmul.f32 %v283_v22, %v199_v21 }
  0x5d   :  { %v147_v13 = vmul.f32 %v145_v11, %v127_v45  ;;  %vm148_vm8 = vcmp.gt.f32.partialorder %v143_v9, 0.70710677  ;;  %v211_v27 = vmul.f32 %v285_v25, %v207_v24  ;;  %v287_v30 = vpop.eup %286  ;;  %v109_v45 = vadd.f32 %v107_v37, %v92_v36 }
  0x5e   :  { %v212_v28 = vsub.f32 0.0, %v203_v26  ;;  %v177_v34 = vrot.slane %v287_v30, 7  ;;  %v289_v40 = vpop.eup %288 }
  0x5f   :  { %v150_v18 = vrot.slane %v147_v13, 1  ;;  %v216_v33 = vsub.f32 0.0, %v211_v27  ;;  %v173_v50 = vmul.f32 %v289_v40, %v469_v41  ;;  %v110_v52 = vsub.f32 %v109_v45, %v467_v38  ;;  %v232_v27 = vld [vmem:[#allocation2] sm:$0x1] }
  0x60   :  { %v213_v35 = vmul.f32 1.442695, %v212_v28  ;;  %v179_v42 = vmul.f32 %v177_v34, %v471_v43 }
  0x61   :  { %v152_v20 = vsel %vm148_vm8, %v150_v18, %v143_v9  ;;  %v217_v39 = vmul.f32 1.442695, %v216_v33  ;;  %v180_v55 = vmul.f32 %v173_v50, %v173_v50  ;;  %v111_v57 = vadd.f32 1e-16, %v110_v52 }
  0x62   :  { %v154_v23 = vmul.f32 %v152_v20, %v152_v20  ;;  %v153_v47 = vmul.f32 2.0, %v152_v20  ;;  %v181_v51 = vmul.f32 %v179_v42, %v179_v42 }
  0x64   :  { %v155_v19 = vsub.f32 1.0, %v154_v23  ;;  %v189_v43 = vrot.slane %v181_v51, 1 }
  0x66   :  { %v156_v10 = vmax.f32 %v155_v19, 0.0 }
  0x68   :  { %290 = vrsqrt.f32 %v156_v10  ;;  %vm159_vm9 = vcmp.eq.f32.partialorder %v156_v10, inf  ;;  %v162_v46 = vand.u32 2147483648, %v156_v10  ;;  %vm161_vm10 = vcmp.eq.f32.partialorder %v156_v10, 0.0 }
  0x69   :  { %292 = vpow2.f32 %v213_v35 }
  0x6a   :  { %294 = vpow2.f32 %v217_v39 }
  0x6b   :  { %296 = vrcp.f32 %v111_v57 }
  0x72   :  { %v291_v44 = vpop.eup %290 }
  0x73   :  { %v158_v48 = vmul.f32 %v291_v44, %v156_v10  ;;  %v293_v58 = vpop.eup %292 }
  0x74   :  { %v295_v60 = vpop.eup %294  ;;  %v215_v1 = vsub.f32 1.0, %v293_v58 }
  0x75   :  { %v160_v49 = vsel %vm159_vm9, %v156_v10, %v158_v48  ;;  %v219_v2 = vsub.f32 1.0, %v295_v60  ;;  %v297_v6 = vpop.eup %296 }
  0x76   :  { %v163_v53 = vsel %vm161_vm10, %v162_v46, %v160_v49  ;;  %v220_v41 = vmul.f32 %v215_v1, %v215_v1  ;;  %v113_v9 = vmul.f32 %v297_v6, %v467_v38  ;;  %v240_v38 = vld [vmem:[#allocation3] sm:$0x1] }
  0x77   :  { %v164_v54 = vmul.f32 %v163_v53, %v153_v47  ;;  %v221_v3 = vmul.f32 %v219_v2, %v219_v2 }
  0x78   :  { %v222_v4 = vmul.f32 %v220_v41, %v220_v41  ;;  %v114_v17 = vand.u32 2147483647, %v113_v9 }
  0x79   :  { %v182_v56 = vsub.f32 2.0, %v164_v54  ;;  %v223_v5 = vmul.f32 %v221_v3, %v221_v3 }
  0x7a   :  { %v225_v21 = vsub.f32 1.0, %v114_v17 }
  0x7b   :  { %v183_v59 = vsub.f32 0.0, %v182_v56  ;;  %v224_v11 = vadd.f32 %v223_v5, %v222_v4 }
  0x7d   :  { %v184_v61 = vmul.f32 %v183_v59, %v180_v55  ;;  %v191_v62 = vmul.f32 %v189_v43, %v183_v59  ;;  %v227_v18 = vmul.f32 %v457_v29, %v224_v11 }
  0x7f   :  { %v185_v63 = vmul.f32 1.442695, %v184_v61  ;;  %v192_v0 = vmul.f32 1.442695, %v191_v62 }
  0x81   :  { %298 = vpow2.f32 %v185_v63 }
  0x82   :  { %300 = vpow2.f32 %v192_v0 }
  0x8b   :  { %v299_v8 = vpop.eup %298 }
  0x8c   :  { %v301_v12 = vpop.eup %300  ;;  %v187_v13 = vsub.f32 1.0, %v299_v8 }
  0x8d   :  { %v194_v14 = vsub.f32 1.0, %v301_v12 }
  0x8f   :  { %v195_v15 = vadd.f32 %v194_v14, %v187_v13 }
  0x91   :  { %v226_v20 = vmul.f32 %v457_v29, %v195_v15 }
  0x93   :  { %v228_v22 = vadd.f32 %v227_v18, %v226_v20 }
  0x95   :  { %v229_v23 = vmul.f32 0.5, %v228_v22 }
  0x97   :  { %v230_v24 = vadd.f32 %v229_v23, %v225_v21 }
  0x99   :  { %v231_v25 = vsel %vm75_vm5, %v230_v24, 0.0 }
  0x9a   :  { %v234_v16 = vsel %vm233_vm11, %v231_v25, 0.0 }
  0x9b   :  { %235 = vadd.xlane.f32.xlu0 %v234_v16 }
  0xc4   :  { %v244_v19 = vpop.xlane.xlu0 %243 }
  0xc5   :  { %v245_v26 = vadd.f32 %v244_v19, %v240_v38 }
  0xc7   :  { %246 = vst.msk [vmem:[#allocation3] sm:$0x1] %vm46_vm0, %v245_v26 }
  0xce   :  { %v251_v7 = vld [vmem:[#allocation3] sm:$0x1] }
  0xcf   :  { %v252_v10 = vadd.f32 1e-08, %v251_v7 }
  0xd1   :  { %302 = vrcp.f32 %v252_v10 }
  0xdb   :  { %v303_v30 = vpop.eup %302 }
 0x128   :  { %v236_v29 = vpop.xlane.xlu0 %235 }
 0x129   :  { %v237_v28 = vadd.f32 %v236_v29, %v232_v27 }
 0x12b   :  { %239 = vst.msk [vmem:[#allocation2] sm:$0x1] %vm46_vm0, %v237_v28 }
 0x132   :  { %v250_v32 = vld [vmem:[#allocation2] sm:$0x1] }
 0x133   :  { %v254_v31 = vmul.f32 %v303_v30, %v250_v32 }
 0x135   :  { %255 = vst.msk [vmem:[#allocation9] sm:$0x1] %vm46_vm0, %v254_v31 }
 0x136   :  { %359 = shalt.err (!%p356_p6)
}
 0x137   :  { %s360_s21 = scalar_lea.hbm %s510_s4, 16 }
 0x138   :  { %p361_p7 = scmp.ne.s32.totalorder %s510_s4, %s360_s21  ;;  %p364_p8 = scmp.lt.u32.totalorder %s360_s21, %s510_s4 }
 0x13a   :  { %p366_p9 = pnand %p364_p8, %p361_p7 }
 0x13c   :  { %369 = shalt.err (!%p366_p9)
}
 0x13d   :  { %265 = dma.vmem_to_hbm [thread:$0]  %s263_s3, 16, %s510_s4, [#allocation6]  }
 0x13e   :  { %374 = dma.done.wait [#allocation6], 16  }
 0x13f   :  { %375 = vsyncadd [#allocation6], 4294967280 }
 0x140   :  { %269 = vsyncpa [#allocation5], 1 }
 0x141   :  { %270 = vsyncpa [#allocation8], 1 }
 0x142   :  { %271 = vsyncpa [#allocation6], 1 }

</bundles_post_ra>
